<compile_context>
chip_gen: v7x
topology: tpu7x:2x2x1
jax: 0.10.0
libtpu: 0.0.40
codegen_flags: <defaults>
</compile_context>

<pallas_src>
import functools

import jax
import jax.numpy as jnp
from jax import lax
from jax.experimental import pallas as pl
from jax.experimental.pallas import tpu as pltpu


# --- constants of the torch module -------------------------------------------------
_ALPHA, _BETA, _GAMMA = 0.5, 0.3, 0.2
_CLS_T = 1.0
_W0, _W1 = 0.01, 0.99                 # mse_wt  (applied as pred*w vs gt*w -> w^2)
_CE_W0, _CE_W1 = 0.01, 0.99           # ce_wt
_BCE_C0 = 1.0 / 99.99                 # bce_wt = C0 + C1*sigmoid(norm)
_BCE_C1 = 1.0 - 1.0 / 99.99

_LANE = 128


def _spatial_plan(hw: int, n_heads: int, bsz: int):
    """Static tiling plan.  Returns (rows_padded, rows_per_block, n_parallel).

    Spatial pixels are viewed as (rows, 128); a grid step streams a chunk of
    `rows_per_block` rows for all heads/batches (~<=6 MiB per hm block)."""
    rows = -(-hw // _LANE)
    row_bytes = n_heads * 5 * bsz * _LANE * 4          # hm-block bytes per chunk-row
    r_cap = (6 * 1024 * 1024) // max(row_bytes, 1)
    r_cap = max(8, min(512, (r_cap // 8) * 8))
    if rows <= r_cap:
        if rows % 16 == 0 and rows >= 32:
            return rows, rows // 2, 2                  # 2-way spatial split (v7x megacore)
        return rows, rows, 1
    for cand in range(r_cap, 7, -8):                   # largest mult-of-8 divisor
        if rows % cand == 0:
            n_par = 2 if (rows // cand) % 2 == 0 else 1
            return rows, cand, n_par
    # TODO(synk): awkward row counts pad up to a multiple of r_cap (extra HBM copy).
    rows_p = -(-rows // r_cap) * r_cap
    n_par = 2 if (rows_p // r_cap) % 2 == 0 else 1
    return rows_p, r_cap, n_par


def _hm_loss_kernel(scal_ref, hm_ref, gt_ref, out_ref, acc_ref, *,
                    n_heads, bsz, hw, r_block, n_steps, masked):
    # scal_ref : SMEM (2,) f32 = [1/max(gt), 1/sum(ce weights)]   (hoisted globals)
    # hm_ref   : VMEM (n_heads, 5*B, R, 128); row = b*5 + c  (natural layout, no transpose)
    # gt_ref   : VMEM (B, R, 128)
    # out_ref  : VMEM (n_heads, 8, 128) per-parallel-half block: row0=l1,row1=l2,row2=l3
    # acc_ref  : VMEM (n_heads, 3, rg, 128) partial-sum accumulators (rg = 8 usually)
    p = pl.program_id(0)
    s = pl.program_id(1)

    @pl.when(s == 0)
    def _init():
        acc_ref[...] = jnp.zeros_like(acc_ref)

    inv_gmax = scal_ref[0]

    # ---- gt-derived tiles: computed ONCE per grid step, reused by every head ----
    tgt0, tgt1, blbl, wbce, posf, wce = [], [], [], [], [], []
    for b in range(bsz):
        g = gt_ref[b].astype(jnp.float32)              # (R, 128)
        norm = g * inv_gmax                            # gt / gt.max()  (faithful: no eps)
        tgt1.append(norm)                              # mse target, joint 1
        tgt0.append(1.0 - norm)                        # mse target, joint 0
        y = jax.nn.sigmoid(norm)                       # bce label (one EUP per tile, not per head)
        blbl.append(y)
        wbce.append(_BCE_C0 + _BCE_C1 * y)             # bce weight
        pf = (g >= _CLS_T).astype(jnp.float32)
        posf.append(pf)
        wce.append(_CE_W0 + (_CE_W1 - _CE_W0) * pf)    # ce class weight

    if masked:
        chunk = p * n_steps + s
        ri = lax.broadcasted_iota(jnp.int32, (r_block, _LANE), 0)
        li = lax.broadcasted_iota(jnp.int32, (r_block, _LANE), 1)
        mask_f = (((chunk * r_block + ri) * _LANE + li) < hw).astype(jnp.float32)

    fold_groups = r_block // 8 if r_block % 8 == 0 else 1

    def _fold(t):
        # mask out padded pixels, then fold the (R,128) term to a vreg-sized partial
        if masked:
            t = t * mask_f
        if fold_groups > 1:
            t = t.reshape(fold_groups, 8, _LANE).sum(axis=0)
        return t

    for h in range(n_heads):
        pm = pb = pc = None
        for b in range(bsz):
            r0 = b * 5
            zm0 = hm_ref[h, r0 + 0].astype(jnp.float32)
            zm1 = hm_ref[h, r0 + 1].astype(jnp.float32)
            zb = hm_ref[h, r0 + 2].astype(jnp.float32)
            zc0 = hm_ref[h, r0 + 3].astype(jnp.float32)
            zc1 = hm_ref[h, r0 + 4].astype(jnp.float32)

            # ---- l1: WeightedMSELoss -> w^2 * (sigmoid(pred) - target)^2, two joints
            d0 = jax.nn.sigmoid(zm0) - tgt0[b]
            d1 = jax.nn.sigmoid(zm1) - tgt1[b]
            mse = (_W0 * _W0) * d0 * d0 + (_W1 * _W1) * d1 * d1

            # ---- l2: weighted BCE-with-logits against sigmoid(norm)
            bce = wbce[b] * (jnp.maximum(zb, 0.0) - zb * blbl[b]
                             + jnp.log(1.0 + jnp.exp(-jnp.abs(zb))))

            # ---- l3: weighted CE over softmax(logits) treated as logits again
            #          ("double softmax", faithful).  d = p1 - p0 = tanh((z1-z0)/2);
            #          -log_softmax(p)[y] = softplus(d) - d*y  (d in (-1,1) -> stable)
            d = jnp.tanh(0.5 * (zc1 - zc0))
            ce = wce[b] * (jnp.log(1.0 + jnp.exp(d)) - d * posf[b])

            fm, fb, fc = _fold(mse), _fold(bce), _fold(ce)
            pm = fm if pm is None else pm + fm
            pb = fb if pb is None else pb + fb
            pc = fc if pc is None else pc + fc

        acc_ref[h, 0] = acc_ref[h, 0] + pm
        acc_ref[h, 1] = acc_ref[h, 1] + pb
        acc_ref[h, 2] = acc_ref[h, 2] + pc

    @pl.when(s == n_steps - 1)
    def _finalize():
        inv_wsum = scal_ref[1]
        inv_npix = 1.0 / float(bsz * hw)
        row = lax.broadcasted_iota(jnp.int32, (8, 128), 0)
        for h in range(n_heads):
            l1 = (0.5 * inv_npix) * jnp.sum(acc_ref[h, 0])
            l2 = inv_npix * jnp.sum(acc_ref[h, 1])
            l3 = inv_wsum * jnp.sum(acc_ref[h, 2])
            out_ref[h] = (jnp.where(row == 0, l1, 0.0)
                          + jnp.where(row == 1, l2, 0.0)
                          + jnp.where(row == 2, l3, 0.0))


def _stacked_hm_losses(hms, gt3, scalars, hw_true, n_par, n_steps, r_block):
    """hms: (N, 5*B, rows_p, 128); gt3: (B, rows_p, 128); scalars: (2,) f32.
    Returns per-head (l1, l2, l3), each shape (N,)."""
    n_heads, ch_rows, rows_p, lane = hms.shape
    bsz = gt3.shape[0]
    masked = rows_p * lane != hw_true
    rg = 8 if r_block % 8 == 0 else r_block

    kernel = functools.partial(
        _hm_loss_kernel, n_heads=n_heads, bsz=bsz, hw=hw_true,
        r_block=r_block, n_steps=n_steps, masked=masked)

    out = pl.pallas_call(
        kernel,
        out_shape=jax.ShapeDtypeStruct((n_par, n_heads, 8, 128), jnp.float32),
        grid=(n_par, n_steps),
        in_specs=[
            pl.BlockSpec(memory_space=pltpu.MemorySpace.SMEM),              # scalars
            pl.BlockSpec((n_heads, ch_rows, r_block, lane),                 # all heads
                         lambda p, s: (0, 0, p * n_steps + s, 0)),
            pl.BlockSpec((bsz, r_block, lane),                              # gt (once/tile)
                         lambda p, s: (0, p * n_steps + s, 0)),
        ],
        out_specs=pl.BlockSpec((None, n_heads, 8, 128),
                               lambda p, s: (p, 0, 0, 0)),
        scratch_shapes=[pltpu.VMEM((n_heads, 3, rg, 128), jnp.float32)],
        compiler_params=pltpu.CompilerParams(
            dimension_semantics=("parallel", "arbitrary"),
            vmem_limit_bytes=32 * 1024 * 1024,
        ),
    )(scalars, hms, gt3)

    # partial (already-normalized) sums across the parallel spatial halves
    l1 = jnp.sum(out[:, :, 0, 0], axis=0)
    l2 = jnp.sum(out[:, :, 1, 0], axis=0)
    l3 = jnp.sum(out[:, :, 2, 0], axis=0)
    return l1, l2, l3


@jax.jit
def _loss_forward(hms_stacked, gt_lbl):
    """hms_stacked: (N, B, 5, H, W); gt_lbl: (B, 1, H, W) (f32 or bf16)."""
    n_heads, bsz, ch, h, w = hms_stacked.shape
    hw = h * w
    rows_p, r_block, n_par = _spatial_plan(hw, n_heads, bsz)
    n_chunks = rows_p // r_block
    n_steps = n_chunks // n_par
    assert n_steps * n_par * r_block == rows_p
    hwp = rows_p * _LANE

    # Free, contiguous reshapes only (no HBM transpose).
    hm_flat = hms_stacked.reshape(n_heads, bsz, ch, hw)
    gt_flat = gt_lbl.reshape(bsz, hw)

    # Hoisted gt-only global reductions (tiny vs. the heatmap stream).
    gt_f = gt_flat.astype(jnp.float32)
    inv_gmax = 1.0 / jnp.max(gt_f)
    wce_sum = jnp.sum(jnp.where(gt_f >= _CLS_T, _CE_W1, _CE_W0))
    scalars = jnp.stack([inv_gmax, 1.0 / wce_sum]).astype(jnp.float32)

    if hwp != hw:
        # TODO(synk): ragged spatial sizes need a zero-pad copy here; the padded
        # pixels are excluded in-kernel via the index mask.
        hm_flat = jnp.pad(hm_flat, ((0, 0), (0, 0), (0, 0), (0, hwp - hw)))
        gt_flat = jnp.pad(gt_flat, ((0, 0), (0, hwp - hw)))

    hms = hm_flat.reshape(n_heads, bsz * ch, rows_p, _LANE)     # row = b*5 + c
    gt3 = gt_flat.reshape(bsz, rows_p, _LANE)

    l1, l2, l3 = _stacked_hm_losses(hms, gt3, scalars, hw, n_par, n_steps, r_block)
    per_head = _ALPHA * l1 + _BETA * l2 + _GAMMA * l3
    return jnp.mean(per_head), (l1, l2, l3)


class Loss:
    """JAX/Pallas port of criterion/loss.py::Loss (list-of-heatmaps branch only)."""

    def __init__(self):
        self.cls_t = 1
        self.alpha = _ALPHA
        self.beta = _BETA
        self.gamma = _GAMMA

    def forward(self, x, gt_lbl):
        if not isinstance(x, list):
            # TODO(synk): tuple/dict (graph / transformer / poolNet) branches not ported.
            raise NotImplementedError("Only the list-of-heatmaps branch is ported to Pallas.")
        assert len(x) >= 1
        shapes = {tuple(hm.shape) for hm in x}
        assert len(shapes) == 1, "all heatmap heads must share a shape"
        assert x[0].shape[1] == 5, "heatmap must have 5 channels [mse0,mse1,bce,ce0,ce1]"
        hms_stacked = jnp.stack(x, axis=0)          # (N, B, 5, H, W)
        total, _ = _loss_forward(hms_stacked, gt_lbl)
        return total

    __call__ = forward


# --- pure-JAX reference (faithful to the torch list-branch) -----------------------
def _reference_loss(x_list, gt_lbl):
    gt = gt_lbl.astype(jnp.float32)                 # (B, 1, H, W)
    norm = gt / jnp.max(gt)
    mse_t = jnp.concatenate([1.0 - norm, norm], axis=1)     # (B, 2, H, W)
    bce_lbl = jax.nn.sigmoid(norm)[:, 0]
    wbce = _BCE_C0 + _BCE_C1 * bce_lbl
    is_pos = gt[:, 0] >= _CLS_T
    wce = jnp.where(is_pos, _CE_W1, _CE_W0)
    totals = []
    for hm in x_list:
        hm = hm.astype(jnp.float32)
        l1 = 0.0
        for j, wgt in enumerate((_W0, _W1)):
            pred = jax.nn.sigmoid(hm[:, j])
            l1 = l1 + jnp.mean((pred * wgt - mse_t[:, j] * wgt) ** 2)
        l1 = l1 / 2.0
        xl = hm[:, 2]
        bce = jnp.maximum(xl, 0.0) - xl * bce_lbl + jnp.log1p(jnp.exp(-jnp.abs(xl)))
        l2 = jnp.mean(wbce * bce)
        p = jax.nn.softmax(hm[:, 3:5], axis=1)
        logp = jax.nn.log_softmax(p, axis=1)
        chosen = jnp.where(is_pos, logp[:, 1], logp[:, 0])
        l3 = -jnp.sum(wce * chosen) / jnp.sum(wce)
        totals.append(_ALPHA * l1 + _BETA * l2 + _GAMMA * l3)
    return sum(totals) / len(totals)


if __name__ == "__main__":
    key = jax.random.PRNGKey(0)
    loss_mod = Loss()

    def _check(n_heads, B, H, W, base_key):
        ks = jax.random.split(base_key, n_heads + 1)
        hms = [jax.random.normal(ks[i], (B, 5, H, W), dtype=jnp.float32)
               for i in range(n_heads)]
        gt = jax.random.uniform(ks[-1], (B, 1, H, W), dtype=jnp.float32,
                                minval=0.0, maxval=2.0)
        total = jax.block_until_ready(loss_mod(hms, gt))
        assert jnp.isfinite(total), "loss is not finite"
        ref = jax.block_until_ready(_reference_loss(hms, gt))
        assert jnp.allclose(total, ref, rtol=1e-4, atol=1e-5), (
            f"heads={n_heads} B={B} HxW={H}x{W}: "
            f"pallas={float(total):.6f} vs ref={float(ref):.6f}")

    k1, k2, k3 = jax.random.split(key, 3)
    _check(2, 2, 16, 16, k1)     # main small case (single grid step)
    _check(3, 2, 10, 10, k2)     # ragged spatial size -> pad + in-kernel mask path
    _check(1, 2, 512, 512, k3)   # multi-step grid + 2-way parallel spatial split

    print("KERNEL_OK")
</pallas_src>

<mosaic_0001>
module attributes {stable_mosaic.version = 11 : i64} {
  func.func @_hm_loss_kernel(%arg0: i32, %arg1: i32, %arg2: memref<2xf32, #tpu.memory_space<smem>>, %arg3: memref<2x10x2x128xf32, #tpu.memory_space<vmem>>, %arg4: memref<2x2x128xf32, #tpu.memory_space<vmem>>, %arg5: memref<1x2x8x128xf32, #tpu.memory_space<vmem>>, %arg6: memref<2x3x2x128xf32, #tpu.memory_space<vmem>>) attributes {dimension_semantics = [#tpu.dimension_semantics<parallel>, #tpu.dimension_semantics<arbitrary>], iteration_bounds = array<i64: 1, 1>, scalar_prefetch = 0 : i64, scratch_operands = 1 : i64, tpu.core_type = #tpu.core_type<tc>, window_params = [{transform_indices = @transform_0, window_bounds = array<i64: 2>}, {transform_indices = @transform_1, window_bounds = array<i64: 2, 10, 2, 128>}, {transform_indices = @transform_2, window_bounds = array<i64: 2, 2, 128>}, {transform_indices = @transform_3, window_bounds = array<i64: 1, 2, 8, 128>}]} {
    %c0_i32 = arith.constant 0 : i32
    %0 = arith.cmpi eq, %arg1, %c0_i32 : i32
    %1 = arith.extui %0 : i1 to i32
    %c0_i32_0 = arith.constant 0 : i32
    %2 = arith.cmpi ne, %1, %c0_i32_0 : i32
    scf.if %2 {
      %cst_177 = arith.constant 0.000000e+00 : f32
      %307 = vector.broadcast %cst_177 : f32 to vector<2x3x2x128xf32>
      %c0_178 = arith.constant 0 : index
      %c0_179 = arith.constant 0 : index
      %c0_180 = arith.constant 0 : index
      %c0_181 = arith.constant 0 : index
      %308 = vector.load %arg6[%c0_178, %c0_179, %c0_180, %c0_181] : memref<2x3x2x128xf32, #tpu.memory_space<vmem>>, vector<2x3x2x128xf32>
      tpu.vector_store %arg6[%c0_178, %c0_179, %c0_180, %c0_181], %307 {strides = array<i32>} : memref<2x3x2x128xf32, #tpu.memory_space<vmem>>, vector<2x3x2x128xf32>,
    } else {
    }
    %c0 = arith.constant 0 : index
    %3 = memref.load %arg2[%c0] : memref<2xf32, #tpu.memory_space<smem>>
    %c0_1 = arith.constant 0 : index
    %c0_2 = arith.constant 0 : index
    %c0_3 = arith.constant 0 : index
    %4 = vector.load %arg4[%c0_1, %c0_2, %c0_3] : memref<2x2x128xf32, #tpu.memory_space<vmem>>, vector<1x2x128xf32>
    %5 = vector.shape_cast %4 : vector<1x2x128xf32> to vector<2x128xf32>
    %6 = vector.broadcast %3 : f32 to vector<2x128xf32>
    %7 = arith.mulf %5, %6 : vector<2x128xf32>
    %cst = arith.constant 1.000000e+00 : f32
    %8 = vector.broadcast %cst : f32 to vector<2x128xf32>
    %9 = arith.subf %8, %7 : vector<2x128xf32>
    %10 = arith.negf %7 : vector<2x128xf32>
    %11 = math.exp %10 : vector<2x128xf32>
    %cst_4 = arith.constant 1.000000e+00 : f32
    %12 = vector.broadcast %cst_4 : f32 to vector<2x128xf32>
    %13 = arith.addf %12, %11 : vector<2x128xf32>
    %14 = arith.divf %12, %13 : vector<2x128xf32>
    %cst_5 = arith.constant 0.989998996 : f32
    %15 = vector.broadcast %cst_5 : f32 to vector<2x128xf32>
    %16 = arith.mulf %15, %14 : vector<2x128xf32>
    %cst_6 = arith.constant 1.000100e-02 : f32
    %17 = vector.broadcast %cst_6 : f32 to vector<2x128xf32>
    %18 = arith.addf %17, %16 : vector<2x128xf32>
    %cst_7 = arith.constant 1.000000e+00 : f32
    %19 = vector.broadcast %cst_7 : f32 to vector<2x128xf32>
    %20 = arith.cmpf oge, %5, %19 : vector<2x128xf32>
    %21 = arith.extui %20 : vector<2x128xi1> to vector<2x128xi32>
    %22 = arith.sitofp %21 : vector<2x128xi32> to vector<2x128xf32>
    %cst_8 = arith.constant 9.800000e-01 : f32
    %23 = vector.broadcast %cst_8 : f32 to vector<2x128xf32>
    %24 = arith.mulf %23, %22 : vector<2x128xf32>
    %cst_9 = arith.constant 0.00999999977 : f32
    %25 = vector.broadcast %cst_9 : f32 to vector<2x128xf32>
    %26 = arith.addf %25, %24 : vector<2x128xf32>
    %c1 = arith.constant 1 : index
    %c0_10 = arith.constant 0 : index
    %c0_11 = arith.constant 0 : index
    %27 = vector.load %arg4[%c1, %c0_10, %c0_11] : memref<2x2x128xf32, #tpu.memory_space<vmem>>, vector<1x2x128xf32>
    %28 = vector.shape_cast %27 : vector<1x2x128xf32> to vector<2x128xf32>
    %29 = vector.broadcast %3 : f32 to vector<2x128xf32>
    %30 = arith.mulf %28, %29 : vector<2x128xf32>
    %cst_12 = arith.constant 1.000000e+00 : f32
    %31 = vector.broadcast %cst_12 : f32 to vector<2x128xf32>
    %32 = arith.subf %31, %30 : vector<2x128xf32>
    %33 = arith.negf %30 : vector<2x128xf32>
    %34 = math.exp %33 : vector<2x128xf32>
    %cst_13 = arith.constant 1.000000e+00 : f32
    %35 = vector.broadcast %cst_13 : f32 to vector<2x128xf32>
    %36 = arith.addf %35, %34 : vector<2x128xf32>
    %37 = arith.divf %35, %36 : vector<2x128xf32>
    %cst_14 = arith.constant 0.989998996 : f32
    %38 = vector.broadcast %cst_14 : f32 to vector<2x128xf32>
    %39 = arith.mulf %38, %37 : vector<2x128xf32>
    %cst_15 = arith.constant 1.000100e-02 : f32
    %40 = vector.broadcast %cst_15 : f32 to vector<2x128xf32>
    %41 = arith.addf %40, %39 : vector<2x128xf32>
    %cst_16 = arith.constant 1.000000e+00 : f32
    %42 = vector.broadcast %cst_16 : f32 to vector<2x128xf32>
    %43 = arith.cmpf oge, %28, %42 : vector<2x128xf32>
    %44 = arith.extui %43 : vector<2x128xi1> to vector<2x128xi32>
    %45 = arith.sitofp %44 : vector<2x128xi32> to vector<2x128xf32>
    %cst_17 = arith.constant 9.800000e-01 : f32
    %46 = vector.broadcast %cst_17 : f32 to vector<2x128xf32>
    %47 = arith.mulf %46, %45 : vector<2x128xf32>
    %cst_18 = arith.constant 0.00999999977 : f32
    %48 = vector.broadcast %cst_18 : f32 to vector<2x128xf32>
    %49 = arith.addf %48, %47 : vector<2x128xf32>
    %c0_19 = arith.constant 0 : index
    %c0_20 = arith.constant 0 : index
    %c0_21 = arith.constant 0 : index
    %c0_22 = arith.constant 0 : index
    %50 = vector.load %arg3[%c0_19, %c0_20, %c0_21, %c0_22] : memref<2x10x2x128xf32, #tpu.memory_space<vmem>>, vector<1x1x2x128xf32>
    %51 = vector.shape_cast %50 : vector<1x1x2x128xf32> to vector<2x128xf32>
    %c0_23 = arith.constant 0 : index
    %c1_24 = arith.constant 1 : index
    %c0_25 = arith.constant 0 : index
    %c0_26 = arith.constant 0 : index
    %52 = vector.load %arg3[%c0_23, %c1_24, %c0_25, %c0_26] : memref<2x10x2x128xf32, #tpu.memory_space<vmem>>, vector<1x1x2x128xf32>
    %53 = vector.shape_cast %52 : vector<1x1x2x128xf32> to vector<2x128xf32>
    %c0_27 = arith.constant 0 : index
    %c2 = arith.constant 2 : index
    %c0_28 = arith.constant 0 : index
    %c0_29 = arith.constant 0 : index
    %54 = vector.load %arg3[%c0_27, %c2, %c0_28, %c0_29] : memref<2x10x2x128xf32, #tpu.memory_space<vmem>>, vector<1x1x2x128xf32>
    %55 = vector.shape_cast %54 : vector<1x1x2x128xf32> to vector<2x128xf32>
    %c0_30 = arith.constant 0 : index
    %c3 = arith.constant 3 : index
    %c0_31 = arith.constant 0 : index
    %c0_32 = arith.constant 0 : index
    %56 = vector.load %arg3[%c0_30, %c3, %c0_31, %c0_32] : memref<2x10x2x128xf32, #tpu.memory_space<vmem>>, vector<1x1x2x128xf32>
    %57 = vector.shape_cast %56 : vector<1x1x2x128xf32> to vector<2x128xf32>
    %c0_33 = arith.constant 0 : index
    %c4 = arith.constant 4 : index
    %c0_34 = arith.constant 0 : index
    %c0_35 = arith.constant 0 : index
    %58 = vector.load %arg3[%c0_33, %c4, %c0_34, %c0_35] : memref<2x10x2x128xf32, #tpu.memory_space<vmem>>, vector<1x1x2x128xf32>
    %59 = vector.shape_cast %58 : vector<1x1x2x128xf32> to vector<2x128xf32>
    %60 = arith.negf %51 : vector<2x128xf32>
    %61 = math.exp %60 : vector<2x128xf32>
    %cst_36 = arith.constant 1.000000e+00 : f32
    %62 = vector.broadcast %cst_36 : f32 to vector<2x128xf32>
    %63 = arith.addf %62, %61 : vector<2x128xf32>
    %64 = arith.divf %62, %63 : vector<2x128xf32>
    %65 = arith.subf %64, %9 : vector<2x128xf32>
    %66 = arith.negf %53 : vector<2x128xf32>
    %67 = math.exp %66 : vector<2x128xf32>
    %cst_37 = arith.constant 1.000000e+00 : f32
    %68 = vector.broadcast %cst_37 : f32 to vector<2x128xf32>
    %69 = arith.addf %68, %67 : vector<2x128xf32>
    %70 = arith.divf %68, %69 : vector<2x128xf32>
    %71 = arith.subf %70, %7 : vector<2x128xf32>
    %cst_38 = arith.constant 9.99999974E-5 : f32
    %72 = vector.broadcast %cst_38 : f32 to vector<2x128xf32>
    %73 = arith.mulf %72, %65 : vector<2x128xf32>
    %74 = arith.mulf %73, %65 : vector<2x128xf32>
    %cst_39 = arith.constant 0.980099976 : f32
    %75 = vector.broadcast %cst_39 : f32 to vector<2x128xf32>
    %76 = arith.mulf %75, %71 : vector<2x128xf32>
    %77 = arith.mulf %76, %71 : vector<2x128xf32>
    %78 = arith.addf %74, %77 : vector<2x128xf32>
    %cst_40 = arith.constant 0.000000e+00 : f32
    %79 = vector.broadcast %cst_40 : f32 to vector<2x128xf32>
    %80 = arith.maximumf %55, %79 : vector<2x128xf32>
    %81 = arith.mulf %55, %14 : vector<2x128xf32>
    %82 = arith.subf %80, %81 : vector<2x128xf32>
    %83 = math.absf %55 : vector<2x128xf32>
    %cst_41 = arith.constant 0.000000e+00 : f32
    %84 = vector.broadcast %cst_41 : f32 to vector<2x128xf32>
    %85 = arith.subf %84, %83 : vector<2x128xf32>
    %86 = math.exp %85 : vector<2x128xf32>
    %cst_42 = arith.constant 1.000000e+00 : f32
    %87 = vector.broadcast %cst_42 : f32 to vector<2x128xf32>
    %88 = arith.addf %87, %86 : vector<2x128xf32>
    %89 = math.log %88 : vector<2x128xf32>
    %90 = arith.addf %82, %89 : vector<2x128xf32>
    %91 = arith.mulf %18, %90 : vector<2x128xf32>
    %92 = arith.subf %59, %57 : vector<2x128xf32>
    %cst_43 = arith.constant 5.000000e-01 : f32
    %93 = vector.broadcast %cst_43 : f32 to vector<2x128xf32>
    %94 = arith.mulf %93, %92 : vector<2x128xf32>
    %95 = math.tanh %94 : vector<2x128xf32>
    %96 = math.exp %95 : vector<2x128xf32>
    %cst_44 = arith.constant 1.000000e+00 : f32
    %97 = vector.broadcast %cst_44 : f32 to vector<2x128xf32>
    %98 = arith.addf %97, %96 : vector<2x128xf32>
    %99 = math.log %98 : vector<2x128xf32>
    %100 = arith.mulf %95, %22 : vector<2x128xf32>
    %101 = arith.subf %99, %100 : vector<2x128xf32>
    %102 = arith.mulf %26, %101 : vector<2x128xf32>
    %c0_45 = arith.constant 0 : index
    %c5 = arith.constant 5 : index
    %c0_46 = arith.constant 0 : index
    %c0_47 = arith.constant 0 : index
    %103 = vector.load %arg3[%c0_45, %c5, %c0_46, %c0_47] : memref<2x10x2x128xf32, #tpu.memory_space<vmem>>, vector<1x1x2x128xf32>
    %104 = vector.shape_cast %103 : vector<1x1x2x128xf32> to vector<2x128xf32>
    %c0_48 = arith.constant 0 : index
    %c6 = arith.constant 6 : index
    %c0_49 = arith.constant 0 : index
    %c0_50 = arith.constant 0 : index
    %105 = vector.load %arg3[%c0_48, %c6, %c0_49, %c0_50] : memref<2x10x2x128xf32, #tpu.memory_space<vmem>>, vector<1x1x2x128xf32>
    %106 = vector.shape_cast %105 : vector<1x1x2x128xf32> to vector<2x128xf32>
    %c0_51 = arith.constant 0 : index
    %c7 = arith.constant 7 : index
    %c0_52 = arith.constant 0 : index
    %c0_53 = arith.constant 0 : index
    %107 = vector.load %arg3[%c0_51, %c7, %c0_52, %c0_53] : memref<2x10x2x128xf32, #tpu.memory_space<vmem>>, vector<1x1x2x128xf32>
    %108 = vector.shape_cast %107 : vector<1x1x2x128xf32> to vector<2x128xf32>
    %c0_54 = arith.constant 0 : index
    %c8 = arith.constant 8 : index
    %c0_55 = arith.constant 0 : index
    %c0_56 = arith.constant 0 : index
    %109 = vector.load %arg3[%c0_54, %c8, %c0_55, %c0_56] : memref<2x10x2x128xf32, #tpu.memory_space<vmem>>, vector<1x1x2x128xf32>
    %110 = vector.shape_cast %109 : vector<1x1x2x128xf32> to vector<2x128xf32>
    %c0_57 = arith.constant 0 : index
    %c9 = arith.constant 9 : index
    %c0_58 = arith.constant 0 : index
    %c0_59 = arith.constant 0 : index
    %111 = vector.load %arg3[%c0_57, %c9, %c0_58, %c0_59] : memref<2x10x2x128xf32, #tpu.memory_space<vmem>>, vector<1x1x2x128xf32>
    %112 = vector.shape_cast %111 : vector<1x1x2x128xf32> to vector<2x128xf32>
    %113 = arith.negf %104 : vector<2x128xf32>
    %114 = math.exp %113 : vector<2x128xf32>
    %cst_60 = arith.constant 1.000000e+00 : f32
    %115 = vector.broadcast %cst_60 : f32 to vector<2x128xf32>
    %116 = arith.addf %115, %114 : vector<2x128xf32>
    %117 = arith.divf %115, %116 : vector<2x128xf32>
    %118 = arith.subf %117, %32 : vector<2x128xf32>
    %119 = arith.negf %106 : vector<2x128xf32>
    %120 = math.exp %119 : vector<2x128xf32>
    %cst_61 = arith.constant 1.000000e+00 : f32
    %121 = vector.broadcast %cst_61 : f32 to vector<2x128xf32>
    %122 = arith.addf %121, %120 : vector<2x128xf32>
    %123 = arith.divf %121, %122 : vector<2x128xf32>
    %124 = arith.subf %123, %30 : vector<2x128xf32>
    %cst_62 = arith.constant 9.99999974E-5 : f32
    %125 = vector.broadcast %cst_62 : f32 to vector<2x128xf32>
    %126 = arith.mulf %125, %118 : vector<2x128xf32>
    %127 = arith.mulf %126, %118 : vector<2x128xf32>
    %cst_63 = arith.constant 0.980099976 : f32
    %128 = vector.broadcast %cst_63 : f32 to vector<2x128xf32>
    %129 = arith.mulf %128, %124 : vector<2x128xf32>
    %130 = arith.mulf %129, %124 : vector<2x128xf32>
    %131 = arith.addf %127, %130 : vector<2x128xf32>
    %cst_64 = arith.constant 0.000000e+00 : f32
    %132 = vector.broadcast %cst_64 : f32 to vector<2x128xf32>
    %133 = arith.maximumf %108, %132 : vector<2x128xf32>
    %134 = arith.mulf %108, %37 : vector<2x128xf32>
    %135 = arith.subf %133, %134 : vector<2x128xf32>
    %136 = math.absf %108 : vector<2x128xf32>
    %cst_65 = arith.constant 0.000000e+00 : f32
    %137 = vector.broadcast %cst_65 : f32 to vector<2x128xf32>
    %138 = arith.subf %137, %136 : vector<2x128xf32>
    %139 = math.exp %138 : vector<2x128xf32>
    %cst_66 = arith.constant 1.000000e+00 : f32
    %140 = vector.broadcast %cst_66 : f32 to vector<2x128xf32>
    %141 = arith.addf %140, %139 : vector<2x128xf32>
    %142 = math.log %141 : vector<2x128xf32>
    %143 = arith.addf %135, %142 : vector<2x128xf32>
    %144 = arith.mulf %41, %143 : vector<2x128xf32>
    %145 = arith.subf %112, %110 : vector<2x128xf32>
    %cst_67 = arith.constant 5.000000e-01 : f32
    %146 = vector.broadcast %cst_67 : f32 to vector<2x128xf32>
    %147 = arith.mulf %146, %145 : vector<2x128xf32>
    %148 = math.tanh %147 : vector<2x128xf32>
    %149 = math.exp %148 : vector<2x128xf32>
    %cst_68 = arith.constant 1.000000e+00 : f32
    %150 = vector.broadcast %cst_68 : f32 to vector<2x128xf32>
    %151 = arith.addf %150, %149 : vector<2x128xf32>
    %152 = math.log %151 : vector<2x128xf32>
    %153 = arith.mulf %148, %45 : vector<2x128xf32>
    %154 = arith.subf %152, %153 : vector<2x128xf32>
    %155 = arith.mulf %49, %154 : vector<2x128xf32>
    %156 = arith.addf %78, %131 : vector<2x128xf32>
    %157 = arith.addf %91, %144 : vector<2x128xf32>
    %158 = arith.addf %102, %155 : vector<2x128xf32>
    %c0_69 = arith.constant 0 : index
    %c0_70 = arith.constant 0 : index
    %c0_71 = arith.constant 0 : index
    %c0_72 = arith.constant 0 : index
    %159 = vector.load %arg6[%c0_69, %c0_70, %c0_71, %c0_72] : memref<2x3x2x128xf32, #tpu.memory_space<vmem>>, vector<1x1x2x128xf32>
    %160 = vector.shape_cast %159 : vector<1x1x2x128xf32> to vector<2x128xf32>
    %161 = arith.addf %160, %156 : vector<2x128xf32>
    %c0_73 = arith.constant 0 : index
    %c0_74 = arith.constant 0 : index
    %c0_75 = arith.constant 0 : index
    %c0_76 = arith.constant 0 : index
    %162 = vector.load %arg6[%c0_73, %c0_74, %c0_75, %c0_76] : memref<2x3x2x128xf32, #tpu.memory_space<vmem>>, vector<1x1x2x128xf32>
    %163 = vector.shape_cast %162 : vector<1x1x2x128xf32> to vector<2x128xf32>
    %164 = vector.shape_cast %161 : vector<2x128xf32> to vector<1x1x2x128xf32>
    tpu.vector_store %arg6[%c0_73, %c0_74, %c0_75, %c0_76], %164 {strides = array<i32>} : memref<2x3x2x128xf32, #tpu.memory_space<vmem>>, vector<1x1x2x128xf32>,
    %c0_77 = arith.constant 0 : index
    %c1_78 = arith.constant 1 : index
    %c0_79 = arith.constant 0 : index
    %c0_80 = arith.constant 0 : index
    %165 = vector.load %arg6[%c0_77, %c1_78, %c0_79, %c0_80] : memref<2x3x2x128xf32, #tpu.memory_space<vmem>>, vector<1x1x2x128xf32>
    %166 = vector.shape_cast %165 : vector<1x1x2x128xf32> to vector<2x128xf32>
    %167 = arith.addf %166, %157 : vector<2x128xf32>
    %c0_81 = arith.constant 0 : index
    %c1_82 = arith.constant 1 : index
    %c0_83 = arith.constant 0 : index
    %c0_84 = arith.constant 0 : index
    %168 = vector.load %arg6[%c0_81, %c1_82, %c0_83, %c0_84] : memref<2x3x2x128xf32, #tpu.memory_space<vmem>>, vector<1x1x2x128xf32>
    %169 = vector.shape_cast %168 : vector<1x1x2x128xf32> to vector<2x128xf32>
    %170 = vector.shape_cast %167 : vector<2x128xf32> to vector<1x1x2x128xf32>
    tpu.vector_store %arg6[%c0_81, %c1_82, %c0_83, %c0_84], %170 {strides = array<i32>} : memref<2x3x2x128xf32, #tpu.memory_space<vmem>>, vector<1x1x2x128xf32>,
    %c0_85 = arith.constant 0 : index
    %c2_86 = arith.constant 2 : index
    %c0_87 = arith.constant 0 : index
    %c0_88 = arith.constant 0 : index
    %171 = vector.load %arg6[%c0_85, %c2_86, %c0_87, %c0_88] : memref<2x3x2x128xf32, #tpu.memory_space<vmem>>, vector<1x1x2x128xf32>
    %172 = vector.shape_cast %171 : vector<1x1x2x128xf32> to vector<2x128xf32>
    %173 = arith.addf %172, %158 : vector<2x128xf32>
    %c0_89 = arith.constant 0 : index
    %c2_90 = arith.constant 2 : index
    %c0_91 = arith.constant 0 : index
    %c0_92 = arith.constant 0 : index
    %174 = vector.load %arg6[%c0_89, %c2_90, %c0_91, %c0_92] : memref<2x3x2x128xf32, #tpu.memory_space<vmem>>, vector<1x1x2x128xf32>
    %175 = vector.shape_cast %174 : vector<1x1x2x128xf32> to vector<2x128xf32>
    %176 = vector.shape_cast %173 : vector<2x128xf32> to vector<1x1x2x128xf32>
    tpu.vector_store %arg6[%c0_89, %c2_90, %c0_91, %c0_92], %176 {strides = array<i32>} : memref<2x3x2x128xf32, #tpu.memory_space<vmem>>, vector<1x1x2x128xf32>,
    %c1_93 = arith.constant 1 : index
    %c0_94 = arith.constant 0 : index
    %c0_95 = arith.constant 0 : index
    %c0_96 = arith.constant 0 : index
    %177 = vector.load %arg3[%c1_93, %c0_94, %c0_95, %c0_96] : memref<2x10x2x128xf32, #tpu.memory_space<vmem>>, vector<1x1x2x128xf32>
    %178 = vector.shape_cast %177 : vector<1x1x2x128xf32> to vector<2x128xf32>
    %c1_97 = arith.constant 1 : index
    %c1_98 = arith.constant 1 : index
    %c0_99 = arith.constant 0 : index
    %c0_100 = arith.constant 0 : index
    %179 = vector.load %arg3[%c1_97, %c1_98, %c0_99, %c0_100] : memref<2x10x2x128xf32, #tpu.memory_space<vmem>>, vector<1x1x2x128xf32>
    %180 = vector.shape_cast %179 : vector<1x1x2x128xf32> to vector<2x128xf32>
    %c1_101 = arith.constant 1 : index
    %c2_102 = arith.constant 2 : index
    %c0_103 = arith.constant 0 : index
    %c0_104 = arith.constant 0 : index
    %181 = vector.load %arg3[%c1_101, %c2_102, %c0_103, %c0_104] : memref<2x10x2x128xf32, #tpu.memory_space<vmem>>, vector<1x1x2x128xf32>
    %182 = vector.shape_cast %181 : vector<1x1x2x128xf32> to vector<2x128xf32>
    %c1_105 = arith.constant 1 : index
    %c3_106 = arith.constant 3 : index
    %c0_107 = arith.constant 0 : index
    %c0_108 = arith.constant 0 : index
    %183 = vector.load %arg3[%c1_105, %c3_106, %c0_107, %c0_108] : memref<2x10x2x128xf32, #tpu.memory_space<vmem>>, vector<1x1x2x128xf32>
    %184 = vector.shape_cast %183 : vector<1x1x2x128xf32> to vector<2x128xf32>
    %c1_109 = arith.constant 1 : index
    %c4_110 = arith.constant 4 : index
    %c0_111 = arith.constant 0 : index
    %c0_112 = arith.constant 0 : index
    %185 = vector.load %arg3[%c1_109, %c4_110, %c0_111, %c0_112] : memref<2x10x2x128xf32, #tpu.memory_space<vmem>>, vector<1x1x2x128xf32>
    %186 = vector.shape_cast %185 : vector<1x1x2x128xf32> to vector<2x128xf32>
    %187 = arith.negf %178 : vector<2x128xf32>
    %188 = math.exp %187 : vector<2x128xf32>
    %cst_113 = arith.constant 1.000000e+00 : f32
    %189 = vector.broadcast %cst_113 : f32 to vector<2x128xf32>
    %190 = arith.addf %189, %188 : vector<2x128xf32>
    %191 = arith.divf %189, %190 : vector<2x128xf32>
    %192 = arith.subf %191, %9 : vector<2x128xf32>
    %193 = arith.negf %180 : vector<2x128xf32>
    %194 = math.exp %193 : vector<2x128xf32>
    %cst_114 = arith.constant 1.000000e+00 : f32
    %195 = vector.broadcast %cst_114 : f32 to vector<2x128xf32>
    %196 = arith.addf %195, %194 : vector<2x128xf32>
    %197 = arith.divf %195, %196 : vector<2x128xf32>
    %198 = arith.subf %197, %7 : vector<2x128xf32>
    %cst_115 = arith.constant 9.99999974E-5 : f32
    %199 = vector.broadcast %cst_115 : f32 to vector<2x128xf32>
    %200 = arith.mulf %199, %192 : vector<2x128xf32>
    %201 = arith.mulf %200, %192 : vector<2x128xf32>
    %cst_116 = arith.constant 0.980099976 : f32
    %202 = vector.broadcast %cst_116 : f32 to vector<2x128xf32>
    %203 = arith.mulf %202, %198 : vector<2x128xf32>
    %204 = arith.mulf %203, %198 : vector<2x128xf32>
    %205 = arith.addf %201, %204 : vector<2x128xf32>
    %cst_117 = arith.constant 0.000000e+00 : f32
    %206 = vector.broadcast %cst_117 : f32 to vector<2x128xf32>
    %207 = arith.maximumf %182, %206 : vector<2x128xf32>
    %208 = arith.mulf %182, %14 : vector<2x128xf32>
    %209 = arith.subf %207, %208 : vector<2x128xf32>
    %210 = math.absf %182 : vector<2x128xf32>
    %cst_118 = arith.constant 0.000000e+00 : f32
    %211 = vector.broadcast %cst_118 : f32 to vector<2x128xf32>
    %212 = arith.subf %211, %210 : vector<2x128xf32>
    %213 = math.exp %212 : vector<2x128xf32>
    %cst_119 = arith.constant 1.000000e+00 : f32
    %214 = vector.broadcast %cst_119 : f32 to vector<2x128xf32>
    %215 = arith.addf %214, %213 : vector<2x128xf32>
    %216 = math.log %215 : vector<2x128xf32>
    %217 = arith.addf %209, %216 : vector<2x128xf32>
    %218 = arith.mulf %18, %217 : vector<2x128xf32>
    %219 = arith.subf %186, %184 : vector<2x128xf32>
    %cst_120 = arith.constant 5.000000e-01 : f32
    %220 = vector.broadcast %cst_120 : f32 to vector<2x128xf32>
    %221 = arith.mulf %220, %219 : vector<2x128xf32>
    %222 = math.tanh %221 : vector<2x128xf32>
    %223 = math.exp %222 : vector<2x128xf32>
    %cst_121 = arith.constant 1.000000e+00 : f32
    %224 = vector.broadcast %cst_121 : f32 to vector<2x128xf32>
    %225 = arith.addf %224, %223 : vector<2x128xf32>
    %226 = math.log %225 : vector<2x128xf32>
    %227 = arith.mulf %222, %22 : vector<2x128xf32>
    %228 = arith.subf %226, %227 : vector<2x128xf32>
    %229 = arith.mulf %26, %228 : vector<2x128xf32>
    %c1_122 = arith.constant 1 : index
    %c5_123 = arith.constant 5 : index
    %c0_124 = arith.constant 0 : index
    %c0_125 = arith.constant 0 : index
    %230 = vector.load %arg3[%c1_122, %c5_123, %c0_124, %c0_125] : memref<2x10x2x128xf32, #tpu.memory_space<vmem>>, vector<1x1x2x128xf32>
    %231 = vector.shape_cast %230 : vector<1x1x2x128xf32> to vector<2x128xf32>
    %c1_126 = arith.constant 1 : index
    %c6_127 = arith.constant 6 : index
    %c0_128 = arith.constant 0 : index
    %c0_129 = arith.constant 0 : index
    %232 = vector.load %arg3[%c1_126, %c6_127, %c0_128, %c0_129] : memref<2x10x2x128xf32, #tpu.memory_space<vmem>>, vector<1x1x2x128xf32>
    %233 = vector.shape_cast %232 : vector<1x1x2x128xf32> to vector<2x128xf32>
    %c1_130 = arith.constant 1 : index
    %c7_131 = arith.constant 7 : index
    %c0_132 = arith.constant 0 : index
    %c0_133 = arith.constant 0 : index
    %234 = vector.load %arg3[%c1_130, %c7_131, %c0_132, %c0_133] : memref<2x10x2x128xf32, #tpu.memory_space<vmem>>, vector<1x1x2x128xf32>
    %235 = vector.shape_cast %234 : vector<1x1x2x128xf32> to vector<2x128xf32>
    %c1_134 = arith.constant 1 : index
    %c8_135 = arith.constant 8 : index
    %c0_136 = arith.constant 0 : index
    %c0_137 = arith.constant 0 : index
    %236 = vector.load %arg3[%c1_134, %c8_135, %c0_136, %c0_137] : memref<2x10x2x128xf32, #tpu.memory_space<vmem>>, vector<1x1x2x128xf32>
    %237 = vector.shape_cast %236 : vector<1x1x2x128xf32> to vector<2x128xf32>
    %c1_138 = arith.constant 1 : index
    %c9_139 = arith.constant 9 : index
    %c0_140 = arith.constant 0 : index
    %c0_141 = arith.constant 0 : index
    %238 = vector.load %arg3[%c1_138, %c9_139, %c0_140, %c0_141] : memref<2x10x2x128xf32, #tpu.memory_space<vmem>>, vector<1x1x2x128xf32>
    %239 = vector.shape_cast %238 : vector<1x1x2x128xf32> to vector<2x128xf32>
    %240 = arith.negf %231 : vector<2x128xf32>
    %241 = math.exp %240 : vector<2x128xf32>
    %cst_142 = arith.constant 1.000000e+00 : f32
    %242 = vector.broadcast %cst_142 : f32 to vector<2x128xf32>
    %243 = arith.addf %242, %241 : vector<2x128xf32>
    %244 = arith.divf %242, %243 : vector<2x128xf32>
    %245 = arith.subf %244, %32 : vector<2x128xf32>
    %246 = arith.negf %233 : vector<2x128xf32>
    %247 = math.exp %246 : vector<2x128xf32>
    %cst_143 = arith.constant 1.000000e+00 : f32
    %248 = vector.broadcast %cst_143 : f32 to vector<2x128xf32>
    %249 = arith.addf %248, %247 : vector<2x128xf32>
    %250 = arith.divf %248, %249 : vector<2x128xf32>
    %251 = arith.subf %250, %30 : vector<2x128xf32>
    %cst_144 = arith.constant 9.99999974E-5 : f32
    %252 = vector.broadcast %cst_144 : f32 to vector<2x128xf32>
    %253 = arith.mulf %252, %245 : vector<2x128xf32>
    %254 = arith.mulf %253, %245 : vector<2x128xf32>
    %cst_145 = arith.constant 0.980099976 : f32
    %255 = vector.broadcast %cst_145 : f32 to vector<2x128xf32>
    %256 = arith.mulf %255, %251 : vector<2x128xf32>
    %257 = arith.mulf %256, %251 : vector<2x128xf32>
    %258 = arith.addf %254, %257 : vector<2x128xf32>
    %cst_146 = arith.constant 0.000000e+00 : f32
    %259 = vector.broadcast %cst_146 : f32 to vector<2x128xf32>
    %260 = arith.maximumf %235, %259 : vector<2x128xf32>
    %261 = arith.mulf %235, %37 : vector<2x128xf32>
    %262 = arith.subf %260, %261 : vector<2x128xf32>
    %263 = math.absf %235 : vector<2x128xf32>
    %cst_147 = arith.constant 0.000000e+00 : f32
    %264 = vector.broadcast %cst_147 : f32 to vector<2x128xf32>
    %265 = arith.subf %264, %263 : vector<2x128xf32>
    %266 = math.exp %265 : vector<2x128xf32>
    %cst_148 = arith.constant 1.000000e+00 : f32
    %267 = vector.broadcast %cst_148 : f32 to vector<2x128xf32>
    %268 = arith.addf %267, %266 : vector<2x128xf32>
    %269 = math.log %268 : vector<2x128xf32>
    %270 = arith.addf %262, %269 : vector<2x128xf32>
    %271 = arith.mulf %41, %270 : vector<2x128xf32>
    %272 = arith.subf %239, %237 : vector<2x128xf32>
    %cst_149 = arith.constant 5.000000e-01 : f32
    %273 = vector.broadcast %cst_149 : f32 to vector<2x128xf32>
    %274 = arith.mulf %273, %272 : vector<2x128xf32>
    %275 = math.tanh %274 : vector<2x128xf32>
    %276 = math.exp %275 : vector<2x128xf32>
    %cst_150 = arith.constant 1.000000e+00 : f32
    %277 = vector.broadcast %cst_150 : f32 to vector<2x128xf32>
    %278 = arith.addf %277, %276 : vector<2x128xf32>
    %279 = math.log %278 : vector<2x128xf32>
    %280 = arith.mulf %275, %45 : vector<2x128xf32>
    %281 = arith.subf %279, %280 : vector<2x128xf32>
    %282 = arith.mulf %49, %281 : vector<2x128xf32>
    %283 = arith.addf %205, %258 : vector<2x128xf32>
    %284 = arith.addf %218, %271 : vector<2x128xf32>
    %285 = arith.addf %229, %282 : vector<2x128xf32>
    %c1_151 = arith.constant 1 : index
    %c0_152 = arith.constant 0 : index
    %c0_153 = arith.constant 0 : index
    %c0_154 = arith.constant 0 : index
    %286 = vector.load %arg6[%c1_151, %c0_152, %c0_153, %c0_154] : memref<2x3x2x128xf32, #tpu.memory_space<vmem>>, vector<1x1x2x128xf32>
    %287 = vector.shape_cast %286 : vector<1x1x2x128xf32> to vector<2x128xf32>
    %288 = arith.addf %287, %283 : vector<2x128xf32>
    %c1_155 = arith.constant 1 : index
    %c0_156 = arith.constant 0 : index
    %c0_157 = arith.constant 0 : index
    %c0_158 = arith.constant 0 : index
    %289 = vector.load %arg6[%c1_155, %c0_156, %c0_157, %c0_158] : memref<2x3x2x128xf32, #tpu.memory_space<vmem>>, vector<1x1x2x128xf32>
    %290 = vector.shape_cast %289 : vector<1x1x2x128xf32> to vector<2x128xf32>
    %291 = vector.shape_cast %288 : vector<2x128xf32> to vector<1x1x2x128xf32>
    tpu.vector_store %arg6[%c1_155, %c0_156, %c0_157, %c0_158], %291 {strides = array<i32>} : memref<2x3x2x128xf32, #tpu.memory_space<vmem>>, vector<1x1x2x128xf32>,
    %c1_159 = arith.constant 1 : index
    %c1_160 = arith.constant 1 : index
    %c0_161 = arith.constant 0 : index
    %c0_162 = arith.constant 0 : index
    %292 = vector.load %arg6[%c1_159, %c1_160, %c0_161, %c0_162] : memref<2x3x2x128xf32, #tpu.memory_space<vmem>>, vector<1x1x2x128xf32>
    %293 = vector.shape_cast %292 : vector<1x1x2x128xf32> to vector<2x128xf32>
    %294 = arith.addf %293, %284 : vector<2x128xf32>
    %c1_163 = arith.constant 1 : index
    %c1_164 = arith.constant 1 : index
    %c0_165 = arith.constant 0 : index
    %c0_166 = arith.constant 0 : index
    %295 = vector.load %arg6[%c1_163, %c1_164, %c0_165, %c0_166] : memref<2x3x2x128xf32, #tpu.memory_space<vmem>>, vector<1x1x2x128xf32>
    %296 = vector.shape_cast %295 : vector<1x1x2x128xf32> to vector<2x128xf32>
    %297 = vector.shape_cast %294 : vector<2x128xf32> to vector<1x1x2x128xf32>
    tpu.vector_store %arg6[%c1_163, %c1_164, %c0_165, %c0_166], %297 {strides = array<i32>} : memref<2x3x2x128xf32, #tpu.memory_space<vmem>>, vector<1x1x2x128xf32>,
    %c1_167 = arith.constant 1 : index
    %c2_168 = arith.constant 2 : index
    %c0_169 = arith.constant 0 : index
    %c0_170 = arith.constant 0 : index
    %298 = vector.load %arg6[%c1_167, %c2_168, %c0_169, %c0_170] : memref<2x3x2x128xf32, #tpu.memory_space<vmem>>, vector<1x1x2x128xf32>
    %299 = vector.shape_cast %298 : vector<1x1x2x128xf32> to vector<2x128xf32>
    %300 = arith.addf %299, %285 : vector<2x128xf32>
    %c1_171 = arith.constant 1 : index
    %c2_172 = arith.constant 2 : index
    %c0_173 = arith.constant 0 : index
    %c0_174 = arith.constant 0 : index
    %301 = vector.load %arg6[%c1_171, %c2_172, %c0_173, %c0_174] : memref<2x3x2x128xf32, #tpu.memory_space<vmem>>, vector<1x1x2x128xf32>
    %302 = vector.shape_cast %301 : vector<1x1x2x128xf32> to vector<2x128xf32>
    %303 = vector.shape_cast %300 : vector<2x128xf32> to vector<1x1x2x128xf32>
    tpu.vector_store %arg6[%c1_171, %c2_172, %c0_173, %c0_174], %303 {strides = array<i32>} : memref<2x3x2x128xf32, #tpu.memory_space<vmem>>, vector<1x1x2x128xf32>,
    %c0_i32_175 = arith.constant 0 : i32
    %304 = arith.cmpi eq, %arg1, %c0_i32_175 : i32
    %305 = arith.extui %304 : i1 to i32
    %c0_i32_176 = arith.constant 0 : i32
    %306 = arith.cmpi ne, %305, %c0_i32_176 : i32
    scf.if %306 {
      %c1_177 = arith.constant 1 : index
      %307 = memref.load %arg2[%c1_177] : memref<2xf32, #tpu.memory_space<smem>>
      %308 = tpu.iota {dimensions = array<i32: 0>} : vector<8x128xi32>
      %c0_178 = arith.constant 0 : index
      %c0_179 = arith.constant 0 : index
      %c0_180 = arith.constant 0 : index
      %c0_181 = arith.constant 0 : index
      %309 = vector.load %arg6[%c0_178, %c0_179, %c0_180, %c0_181] : memref<2x3x2x128xf32, #tpu.memory_space<vmem>>, vector<1x1x2x128xf32>
      %310 = vector.shape_cast %309 : vector<1x1x2x128xf32> to vector<2x128xf32>
      %311 = vector.shape_cast %310 : vector<2x128xf32> to vector<1x2x128xf32>
      %cst_182 = arith.constant dense<0.000000e+00> : vector<1xf32>
      %312 = vector.multi_reduction <add>, %311, %cst_182 [1, 2] : vector<1x2x128xf32> to vector<1xf32>
      %313 = vector.shape_cast %312 : vector<1xf32> to vector<1x1x1xf32>
      %314 = vector.extract %313[0, 0, 0] : f32 from vector<1x1x1xf32>
      %cst_183 = arith.constant 9.765625E-4 : f32
      %315 = arith.mulf %cst_183, %314 : f32
      %c0_184 = arith.constant 0 : index
      %c1_185 = arith.constant 1 : index
      %c0_186 = arith.constant 0 : index
      %c0_187 = arith.constant 0 : index
      %316 = vector.load %arg6[%c0_184, %c1_185, %c0_186, %c0_187] : memref<2x3x2x128xf32, #tpu.memory_space<vmem>>, vector<1x1x2x128xf32>
      %317 = vector.shape_cast %316 : vector<1x1x2x128xf32> to vector<2x128xf32>
      %318 = vector.shape_cast %317 : vector<2x128xf32> to vector<1x2x128xf32>
      %cst_188 = arith.constant dense<0.000000e+00> : vector<1xf32>
      %319 = vector.multi_reduction <add>, %318, %cst_188 [1, 2] : vector<1x2x128xf32> to vector<1xf32>
      %320 = vector.shape_cast %319 : vector<1xf32> to vector<1x1x1xf32>
      %321 = vector.extract %320[0, 0, 0] : f32 from vector<1x1x1xf32>
      %cst_189 = arith.constant 0.001953125 : f32
      %322 = arith.mulf %cst_189, %321 : f32
      %c0_190 = arith.constant 0 : index
      %c2_191 = arith.constant 2 : index
      %c0_192 = arith.constant 0 : index
      %c0_193 = arith.constant 0 : index
      %323 = vector.load %arg6[%c0_190, %c2_191, %c0_192, %c0_193] : memref<2x3x2x128xf32, #tpu.memory_space<vmem>>, vector<1x1x2x128xf32>
      %324 = vector.shape_cast %323 : vector<1x1x2x128xf32> to vector<2x128xf32>
      %325 = vector.shape_cast %324 : vector<2x128xf32> to vector<1x2x128xf32>
      %cst_194 = arith.constant dense<0.000000e+00> : vector<1xf32>
      %326 = vector.multi_reduction <add>, %325, %cst_194 [1, 2] : vector<1x2x128xf32> to vector<1xf32>
      %327 = vector.shape_cast %326 : vector<1xf32> to vector<1x1x1xf32>
      %328 = vector.extract %327[0, 0, 0] : f32 from vector<1x1x1xf32>
      %329 = arith.mulf %307, %328 : f32
      %c0_i32_195 = arith.constant 0 : i32
      %330 = vector.broadcast %c0_i32_195 : i32 to vector<8x128xi32>
      %331 = arith.cmpi eq, %308, %330 : vector<8x128xi32>
      %cst_196 = arith.constant 0.000000e+00 : f32
      %332 = vector.broadcast %315 : f32 to vector<8x128xf32>
      %333 = vector.broadcast %cst_196 : f32 to vector<8x128xf32>
      %334 = arith.select %331, %332, %333 : vector<8x128xi1>, vector<8x128xf32>
      %c1_i32 = arith.constant 1 : i32
      %335 = vector.broadcast %c1_i32 : i32 to vector<8x128xi32>
      %336 = arith.cmpi eq, %308, %335 : vector<8x128xi32>
      %cst_197 = arith.constant 0.000000e+00 : f32
      %337 = vector.broadcast %322 : f32 to vector<8x128xf32>
      %338 = vector.broadcast %cst_197 : f32 to vector<8x128xf32>
      %339 = arith.select %336, %337, %338 : vector<8x128xi1>, vector<8x128xf32>
      %340 = arith.addf %334, %339 : vector<8x128xf32>
      %c2_i32 = arith.constant 2 : i32
      %341 = vector.broadcast %c2_i32 : i32 to vector<8x128xi32>
      %342 = arith.cmpi eq, %308, %341 : vector<8x128xi32>
      %cst_198 = arith.constant 0.000000e+00 : f32
      %343 = vector.broadcast %329 : f32 to vector<8x128xf32>
      %344 = vector.broadcast %cst_198 : f32 to vector<8x128xf32>
      %345 = arith.select %342, %343, %344 : vector<8x128xi1>, vector<8x128xf32>
      %346 = arith.addf %340, %345 : vector<8x128xf32>
      %c0_199 = arith.constant 0 : index
      %c0_200 = arith.constant 0 : index
      %c0_201 = arith.constant 0 : index
      %c0_202 = arith.constant 0 : index
      %347 = vector.load %arg5[%c0_199, %c0_200, %c0_201, %c0_202] : memref<1x2x8x128xf32, #tpu.memory_space<vmem>>, vector<1x1x8x128xf32>
      %348 = vector.shape_cast %347 : vector<1x1x8x128xf32> to vector<8x128xf32>
      %349 = vector.shape_cast %346 : vector<8x128xf32> to vector<1x1x8x128xf32>
      tpu.vector_store %arg5[%c0_199, %c0_200, %c0_201, %c0_202], %349 {strides = array<i32>} : memref<1x2x8x128xf32, #tpu.memory_space<vmem>>, vector<1x1x8x128xf32>,
      %c1_203 = arith.constant 1 : index
      %c0_204 = arith.constant 0 : index
      %c0_205 = arith.constant 0 : index
      %c0_206 = arith.constant 0 : index
      %350 = vector.load %arg6[%c1_203, %c0_204, %c0_205, %c0_206] : memref<2x3x2x128xf32, #tpu.memory_space<vmem>>, vector<1x1x2x128xf32>
      %351 = vector.shape_cast %350 : vector<1x1x2x128xf32> to vector<2x128xf32>
      %352 = vector.shape_cast %351 : vector<2x128xf32> to vector<1x2x128xf32>
      %cst_207 = arith.constant dense<0.000000e+00> : vector<1xf32>
      %353 = vector.multi_reduction <add>, %352, %cst_207 [1, 2] : vector<1x2x128xf32> to vector<1xf32>
      %354 = vector.shape_cast %353 : vector<1xf32> to vector<1x1x1xf32>
      %355 = vector.extract %354[0, 0, 0] : f32 from vector<1x1x1xf32>
      %cst_208 = arith.constant 9.765625E-4 : f32
      %356 = arith.mulf %cst_208, %355 : f32
      %c1_209 = arith.constant 1 : index
      %c1_210 = arith.constant 1 : index
      %c0_211 = arith.constant 0 : index
      %c0_212 = arith.constant 0 : index
      %357 = vector.load %arg6[%c1_209, %c1_210, %c0_211, %c0_212] : memref<2x3x2x128xf32, #tpu.memory_space<vmem>>, vector<1x1x2x128xf32>
      %358 = vector.shape_cast %357 : vector<1x1x2x128xf32> to vector<2x128xf32>
      %359 = vector.shape_cast %358 : vector<2x128xf32> to vector<1x2x128xf32>
      %cst_213 = arith.constant dense<0.000000e+00> : vector<1xf32>
      %360 = vector.multi_reduction <add>, %359, %cst_213 [1, 2] : vector<1x2x128xf32> to vector<1xf32>
      %361 = vector.shape_cast %360 : vector<1xf32> to vector<1x1x1xf32>
      %362 = vector.extract %361[0, 0, 0] : f32 from vector<1x1x1xf32>
      %cst_214 = arith.constant 0.001953125 : f32
      %363 = arith.mulf %cst_214, %362 : f32
      %c1_215 = arith.constant 1 : index
      %c2_216 = arith.constant 2 : index
      %c0_217 = arith.constant 0 : index
      %c0_218 = arith.constant 0 : index
      %364 = vector.load %arg6[%c1_215, %c2_216, %c0_217, %c0_218] : memref<2x3x2x128xf32, #tpu.memory_space<vmem>>, vector<1x1x2x128xf32>
      %365 = vector.shape_cast %364 : vector<1x1x2x128xf32> to vector<2x128xf32>
      %366 = vector.shape_cast %365 : vector<2x128xf32> to vector<1x2x128xf32>
      %cst_219 = arith.constant dense<0.000000e+00> : vector<1xf32>
      %367 = vector.multi_reduction <add>, %366, %cst_219 [1, 2] : vector<1x2x128xf32> to vector<1xf32>
      %368 = vector.shape_cast %367 : vector<1xf32> to vector<1x1x1xf32>
      %369 = vector.extract %368[0, 0, 0] : f32 from vector<1x1x1xf32>
      %370 = arith.mulf %307, %369 : f32
      %c0_i32_220 = arith.constant 0 : i32
      %371 = vector.broadcast %c0_i32_220 : i32 to vector<8x128xi32>
      %372 = arith.cmpi eq, %308, %371 : vector<8x128xi32>
      %cst_221 = arith.constant 0.000000e+00 : f32
      %373 = vector.broadcast %356 : f32 to vector<8x128xf32>
      %374 = vector.broadcast %cst_221 : f32 to vector<8x128xf32>
      %375 = arith.select %372, %373, %374 : vector<8x128xi1>, vector<8x128xf32>
      %c1_i32_222 = arith.constant 1 : i32
      %376 = vector.broadcast %c1_i32_222 : i32 to vector<8x128xi32>
      %377 = arith.cmpi eq, %308, %376 : vector<8x128xi32>
      %cst_223 = arith.constant 0.000000e+00 : f32
      %378 = vector.broadcast %363 : f32 to vector<8x128xf32>
      %379 = vector.broadcast %cst_223 : f32 to vector<8x128xf32>
      %380 = arith.select %377, %378, %379 : vector<8x128xi1>, vector<8x128xf32>
      %381 = arith.addf %375, %380 : vector<8x128xf32>
      %c2_i32_224 = arith.constant 2 : i32
      %382 = vector.broadcast %c2_i32_224 : i32 to vector<8x128xi32>
      %383 = arith.cmpi eq, %308, %382 : vector<8x128xi32>
      %cst_225 = arith.constant 0.000000e+00 : f32
      %384 = vector.broadcast %370 : f32 to vector<8x128xf32>
      %385 = vector.broadcast %cst_225 : f32 to vector<8x128xf32>
      %386 = arith.select %383, %384, %385 : vector<8x128xi1>, vector<8x128xf32>
      %387 = arith.addf %381, %386 : vector<8x128xf32>
      %c0_226 = arith.constant 0 : index
      %c1_227 = arith.constant 1 : index
      %c0_228 = arith.constant 0 : index
      %c0_229 = arith.constant 0 : index
      %388 = vector.load %arg5[%c0_226, %c1_227, %c0_228, %c0_229] : memref<1x2x8x128xf32, #tpu.memory_space<vmem>>, vector<1x1x8x128xf32>
      %389 = vector.shape_cast %388 : vector<1x1x8x128xf32> to vector<8x128xf32>
      %390 = vector.shape_cast %387 : vector<8x128xf32> to vector<1x1x8x128xf32>
      tpu.vector_store %arg5[%c0_226, %c1_227, %c0_228, %c0_229], %390 {strides = array<i32>} : memref<1x2x8x128xf32, #tpu.memory_space<vmem>>, vector<1x1x8x128xf32>,
    } else {
    }
    return
  }
  func.func @transform_0(%arg0: i32, %arg1: i32) -> i32 {
    %c0_i32 = arith.constant 0 : i32
    %c0_i32_0 = arith.constant 0 : i32
    return %c0_i32 : i32
  }
  func.func @transform_1(%arg0: i32, %arg1: i32) -> (i32, i32, i32, i32) {
    %c1_i32 = arith.constant 1 : i32
    %0 = arith.muli %arg0, %c1_i32 : i32
    %1 = arith.addi %0, %arg1 : i32
    %c0_i32 = arith.constant 0 : i32
    %c0_i32_0 = arith.constant 0 : i32
    %c0_i32_1 = arith.constant 0 : i32
    %c0_i32_2 = arith.constant 0 : i32
    return %c0_i32, %c0_i32_0, %1, %c0_i32_1 : i32, i32, i32, i32
  }
  func.func @transform_2(%arg0: i32, %arg1: i32) -> (i32, i32, i32) {
    %c1_i32 = arith.constant 1 : i32
    %0 = arith.muli %arg0, %c1_i32 : i32
    %1 = arith.addi %0, %arg1 : i32
    %c0_i32 = arith.constant 0 : i32
    %c0_i32_0 = arith.constant 0 : i32
    %c0_i32_1 = arith.constant 0 : i32
    return %c0_i32, %1, %c0_i32_0 : i32, i32, i32
  }
  func.func @transform_3(%arg0: i32, %arg1: i32) -> (i32, i32, i32, i32) {
    %c0_i32 = arith.constant 0 : i32
    %c0_i32_0 = arith.constant 0 : i32
    %c0_i32_1 = arith.constant 0 : i32
    %c0_i32_2 = arith.constant 0 : i32
    return %arg0, %c0_i32, %c0_i32_0, %c0_i32_1 : i32, i32, i32, i32
  }
}

</mosaic_0001>

<bundles_post_ra>
// kernel: _loss_forward.1
= control target key start
LH: loop header
LB: loop body
LE: loop exit
PB: predicated region body
PF: predicated region fallthrough
CT: control target
= control target key end

     0   :  { %8 = vsyncpa [#allocation4], 0  ;;  %s784_s0 = inlined_call_operand.vmem [shape: f32[2], index: 0, kind: input, shape index: {}]   ;;  %s785_s1 = inlined_call_operand.vmem [shape: f32[2,10,2,128], index: 1, kind: input, shape index: {}]   ;;  %s786_s2 = inlined_call_operand.vmem [shape: f32[2,2,128], index: 2, kind: input, shape index: {}]   ;;  %s787_s3 = inlined_call_operand.vmem [shape: f32[1,2,8,128], index: 3, kind: output, shape index: {}]  }
   0x1   :  { %s15_s14 = sshll.u32 %s784_s0, 4  ;;  %s16_s14 = int_to_ptr.vmem [resolvable:$true] %s15_s14 }
   0x2   :  { %s588_s15 = scalar_lea.vmem %s16_s14, 16  ;;  %p593_p1 = scmp.lt.s32.totalorder %s16_s14, %s16_s14 }
   0x3   :  { %p589_p0 = scmp.ne.s32.totalorder %s16_s14, %s588_s15  ;;  %p594_p2 = scmp.lt.s32.totalorder %s588_s15, %s588_s15 }
   0x5   :  { %p595_p3 = por %p594_p2, %p593_p1 }
   0x7   :  { %p596_p4 = pnand %p595_p3, %p589_p0 }
   0x9   :  { %599 = shalt.err (!%p596_p4)
}
   0xa   :  { %s602_s16 = smov [#allocation3]  }
   0xb   :  { %18 = dma.vmem_to_smem %s16_s14, 16, %s602_s16, [#allocation4]  }
   0xc   :  { %600 = dma.done.wait [#allocation4], 16  }
   0xd   :  { %601 = vsyncadd [#allocation4], 4294967280 }
   0xe   :  { %38 = sfence }
   0xf   :  { %s71_s17 = sld [smem:[#allocation3]]  ;;  %v603_v0 = vmov 0.0   ;;  %v106_v1 = vld [vmem:[%s785_s1] sm:$0x3]  ;;  %v465_v2 = vld [vmem:[%s785_s1 + $0x2] sm:$0x3] }
  0x10   :  { %65 = vst [vmem:[#allocation2] sm:$0x3] %v603_v0  ;;  %66 = vst [vmem:[#allocation2 + $0x2] sm:$0x3] %v603_v0  ;;  %v642_v3 = vld [vmem:[%s786_s2] sm:$0x3] }
  0x11   :  { %67 = vst [vmem:[#allocation2 + $0x4] sm:$0x3] %v603_v0  ;;  %68 = vst [vmem:[#allocation2 + $0x6] sm:$0x3] %v603_v0  ;;  %v647_v4 = vld [vmem:[%s786_s2 + $0x2] sm:$0x3] }
  0x12   :  { %69 = vst [vmem:[#allocation2 + $0x8] sm:$0x3] %v603_v0  ;;  %70 = vst [vmem:[#allocation2 + $0xa] sm:$0x3] %v603_v0  ;;  %v469_v5 = vmul.f32 -1.442695, %v106_v1 }
  0x13   :  { %v470_v6 = vmul.f32 -1.442695, %v465_v2  ;;  %v471_v7 = vld [vmem:[%s785_s1 + $0xa] sm:$0x3]  ;;  %v472_v8 = vld [vmem:[%s785_s1 + $0xc] sm:$0x3] }
  0x14   :  { %v476_v9 = vmul.f32 -1.442695, %v471_v7  ;;  %v478_v10 = vld [vmem:[%s785_s1 + $0x14] sm:$0x3]  ;;  %508 = vpow2.f32 %v469_v5  ;;  %v477_v11 = vmul.f32 -1.442695, %v472_v8 }
  0x15   :  { %v479_v12 = vld [vmem:[%s785_s1 + $0x16] sm:$0x3]  ;;  %v483_v13 = vmul.f32 -1.442695, %v478_v10  ;;  %510 = vpow2.f32 %v470_v6  ;;  %v73_v14 = vstv %s71_s17  ;;  %v485_v16 = vld [vmem:[%s785_s1 + $0x1e] sm:$0x3] }
  0x16   :  { %512 = vpow2.f32 %v476_v9  ;;  %v484_v15 = vmul.f32 -1.442695, %v479_v12  ;;  %v667_v17 = vld [vmem:[%s785_s1 + $0x4] sm:$0x3]  ;;  %v670_v18 = vmul.f32 %v73_v14, %v642_v3  ;;  %v673_v19 = vmul.f32 %v647_v4, %v73_v14  ;;  %v486_v20 = vld [vmem:[%s785_s1 + $0x20] sm:$0x3] }
  0x17   :  { %514 = vpow2.f32 %v477_v11  ;;  %v681_v21 = vld [vmem:[%s785_s1 + $0xe] sm:$0x3]  ;;  %v137_v22 = vand.u32 2147483647, %v667_v17  ;;  %v687_v23 = vld [vmem:[%s785_s1 + $0x18] sm:$0x3] }
  0x18   :  { %516 = vpow2.f32 %v483_v13  ;;  %v460_v24 = vmul.f32 -1.442695, %v670_v18  ;;  %v463_v25 = vmul.f32 -1.442695, %v673_v19  ;;  %v490_v26 = vmul.f32 -1.442695, %v485_v16 }
  0x19   :  { %518 = vpow2.f32 %v484_v15  ;;  %v491_v27 = vmul.f32 -1.442695, %v486_v20  ;;  %v138_v28 = vsub.f32 0.0, %v137_v22  ;;  %v189_v29 = vand.u32 2147483647, %v681_v21  ;;  %s492_s6 = sld [smem:[#allocation3 + $0x1]] }
  0x1a   :  { %520 = vpow2.f32 %v460_v24  ;;  %v255_v30 = vand.u32 2147483647, %v687_v23  ;;  %v696_v38 = vld [vmem:[%s785_s1 + $0x22] sm:$0x3]  ;;  %v467_v49 = vld [vmem:[%s785_s1 + $0x6] sm:$0x3] }
  0x1b   :  { %522 = vpow2.f32 %v463_v25  ;;  %v139_v31 = vmul.f32 1.442695, %v138_v28  ;;  %v190_v32 = vsub.f32 0.0, %v189_v29  ;;  %v307_v46 = vand.u32 2147483647, %v696_v38 }
  0x1c   :  { %524 = vpow2.f32 %v490_v26  ;;  %v256_v35 = vsub.f32 0.0, %v255_v30  ;;  %v468_v50 = vld [vmem:[%s785_s1 + $0x8] sm:$0x3]  ;;  %v474_v53 = vld [vmem:[%s785_s1 + $0x10] sm:$0x3]  ;;  %v75_v5 = vsub.f32 1.0, %v670_v18 }
  0x1d   :  { %526 = vpow2.f32 %v491_v27  ;;  %v191_v34 = vmul.f32 1.442695, %v190_v32  ;;  %v475_v54 = vld [vmem:[%s785_s1 + $0x12] sm:$0x3]  ;;  %v308_v57 = vsub.f32 0.0, %v307_v46  ;;  %v146_v62 = vsub.f32 %v468_v50, %v467_v49 }
  0x1e   :  { %v509_v33 = vpop.eup %508  ;;  %528 = vpow2.f32 %v139_v31  ;;  %v257_v45 = vmul.f32 1.442695, %v256_v35  ;;  %v481_v58 = vld [vmem:[%s785_s1 + $0x1a] sm:$0x3]  ;;  %v482_v59 = vld [vmem:[%s785_s1 + $0x1c] sm:$0x3]  ;;  %v198_v7 = vsub.f32 %v475_v54, %v474_v53 }
  0x1f   :  { %v511_v36 = vpop.eup %510  ;;  %v118_v37 = vadd.f32 1.0, %v509_v33  ;;  %530 = vpow2.f32 %v191_v34  ;;  %v488_v63 = vld [vmem:[%s785_s1 + $0x24] sm:$0x3]  ;;  %v489_v1 = vld [vmem:[%s785_s1 + $0x26] sm:$0x3]  ;;  %v92_v9 = vsub.f32 1.0, %v673_v19  ;;  %v264_v11 = vsub.f32 %v482_v59, %v481_v58 }
  0x20   :  { %v513_v39 = vpop.eup %512  ;;  %v125_v40 = vadd.f32 1.0, %v511_v36  ;;  %v309_v14 = vmul.f32 1.442695, %v308_v57  ;;  %v316_v15 = vsub.f32 %v489_v1, %v488_v63  ;;  %v147_v22 = vmul.f32 0.5, %v146_v62 }
  0x21   :  { %v515_v41 = vpop.eup %514  ;;  %532 = vrcp.f32 %v118_v37  ;;  %v170_v42 = vadd.f32 1.0, %v513_v39  ;;  %v199_v26 = vmul.f32 0.5, %v198_v7  ;;  %v265_v29 = vmul.f32 0.5, %v264_v11 }
  0x22   :  { %v517_v43 = vpop.eup %516  ;;  %534 = vrcp.f32 %v125_v40  ;;  %v177_v44 = vadd.f32 1.0, %v515_v41  ;;  %v317_v33 = vmul.f32 0.5, %v316_v15  ;;  %v134_v37 = vmax.f32 %v667_v17, 0.0 }
  0x23   :  { %536 = vrcp.f32 %v170_v42  ;;  %v236_v47 = vadd.f32 1.0, %v517_v43  ;;  %v519_v48 = vpop.eup %518  ;;  %v186_v46 = vmax.f32 %v681_v21, 0.0  ;;  %vm349_vm0 = vcmask 1041408  }
  0x24   :  { %538 = vrcp.f32 %v177_v44  ;;  %v521_v51 = vpop.eup %520  ;;  %v243_v52 = vadd.f32 1.0, %v519_v48  ;;  %vm84_vm1 = vcmp.ge.f32.partialorder %v642_v3, 1.0  ;;  %vm101_vm2 = vcmp.ge.f32.partialorder %v647_v4, 1.0 }
  0x25   :  { %540 = vrcp.f32 %v236_v47  ;;  %v523_v55 = vpop.eup %522  ;;  %v79_v56 = vadd.f32 1.0, %v521_v51 }
  0x26   :  { %542 = vpow2.f32 %v257_v45  ;;  %v525_v60 = vpop.eup %524  ;;  %v96_v61 = vadd.f32 1.0, %v523_v55 }
  0x27   :  { %544 = vrcp.f32 %v243_v52  ;;  %v527_v2 = vpop.eup %526  ;;  %v288_v6 = vadd.f32 1.0, %v525_v60 }
  0x28   :  { %546 = vrcp.f32 %v79_v56  ;;  %v529_v8 = vpop.eup %528  ;;  %v295_v10 = vadd.f32 1.0, %v527_v2  ;;  %v212_v2 = vld [vmem:[#allocation2] sm:$0x3] }
  0x29   :  { %548 = vrcp.f32 %v96_v61  ;;  %v531_v12 = vpop.eup %530  ;;  %v141_v13 = vadd.f32 1.0, %v529_v8 }
  0x2a   :  { %550 = vrcp.f32 %v288_v6  ;;  %v193_v20 = vadd.f32 1.0, %v531_v12 }
  0x2b   :  { %v533_v16 = vpop.eup %532  ;;  %552 = vrcp.f32 %v295_v10 }
  0x2c   :  { %v535_v24 = vpop.eup %534  ;;  %v121_v25 = vsub.f32 %v533_v16, %v75_v5  ;;  %554 = vlog2.f32 %v141_v13 }
  0x2d   :  { %v537_v27 = vpop.eup %536  ;;  %v128_v28 = vsub.f32 %v535_v24, %v670_v18  ;;  %556 = vlog2.f32 %v193_v20 }
  0x2e   :  { %v539_v30 = vpop.eup %538  ;;  %v129_v31 = vmul.f32 0.0001, %v121_v25  ;;  %v173_v32 = vsub.f32 %v537_v27, %v92_v9  ;;  %558 = vpow2.f32 %v309_v14 }
  0x2f   :  { %v541_v34 = vpop.eup %540  ;;  %v131_v35 = vmul.f32 0.9801, %v128_v28  ;;  %v180_v36 = vsub.f32 %v539_v30, %v673_v19  ;;  %560 = vtanh.f32 %v147_v22 }
  0x30   :  { %v543_v39 = vpop.eup %542  ;;  %v130_v40 = vmul.f32 %v129_v31, %v121_v25  ;;  %v181_v41 = vmul.f32 0.0001, %v173_v32  ;;  %v239_v42 = vsub.f32 %v541_v34, %v75_v5  ;;  %562 = vtanh.f32 %v199_v26 }
  0x31   :  { %v545_v43 = vpop.eup %544  ;;  %v132_v44 = vmul.f32 %v131_v35, %v128_v28  ;;  %v183_v45 = vmul.f32 0.9801, %v180_v36  ;;  %564 = vtanh.f32 %v265_v29  ;;  %v259_v60 = vadd.f32 1.0, %v543_v39  ;;  %v331_v35 = vld [vmem:[#allocation2 + $0x6] sm:$0x3] }
  0x32   :  { %v547_v47 = vpop.eup %546  ;;  %v182_v48 = vmul.f32 %v181_v41, %v173_v32  ;;  %v246_v49 = vsub.f32 %v545_v43, %v670_v18  ;;  %v247_v50 = vmul.f32 0.0001, %v239_v42  ;;  %566 = vtanh.f32 %v317_v33 }
  0x33   :  { %v730_v51 = vpop.eup %548  ;;  %v133_v52 = vadd.f32 %v132_v44, %v130_v40  ;;  %v184_v53 = vmul.f32 %v183_v45, %v180_v36  ;;  %v82_v54 = vmul.f32 0.989999, %v547_v47  ;;  %v135_v55 = vmul.f32 %v547_v47, %v667_v17 }
  0x34   :  { %v551_v56 = vpop.eup %550  ;;  %v249_v57 = vmul.f32 0.9801, %v246_v49  ;;  %v99_v58 = vmul.f32 0.989999, %v730_v51  ;;  %v187_v59 = vmul.f32 %v730_v51, %v681_v21  ;;  %v248_v5 = vmul.f32 %v247_v50, %v239_v42 }
  0x35   :  { %v553_v61 = vpop.eup %552  ;;  %v185_v62 = vadd.f32 %v184_v53, %v182_v48  ;;  %v291_v18 = vsub.f32 %v551_v56, %v92_v9  ;;  %v136_v63 = vsub.f32 %v134_v37, %v135_v55  ;;  %v83_v12 = vadd.f32 0.010001, %v82_v54  ;;  %v216_v37 = vld [vmem:[#allocation2 + $0x2] sm:$0x3] }
  0x36   :  { %v555_v1 = vpop.eup %554  ;;  %v250_v6 = vmul.f32 %v249_v57, %v246_v49  ;;  %v298_v7 = vsub.f32 %v553_v61, %v673_v19  ;;  %v188_v8 = vsub.f32 %v186_v46, %v187_v59  ;;  %v737_v21 = vadd.f32 0.010001, %v99_v58 }
  0x37   :  { %v557_v17 = vpop.eup %556  ;;  %v209_v10 = vadd.f32 %v185_v62, %v133_v52  ;;  %v299_v11 = vmul.f32 0.0001, %v291_v18  ;;  %v143_v13 = vmul.f32 0.6931472, %v555_v1  ;;  %568 = vlog2.f32 %v259_v60 }
  0x38   :  { %v559_v14 = vpop.eup %558  ;;  %v301_v15 = vmul.f32 0.9801, %v298_v7  ;;  %v195_v16 = vmul.f32 0.6931472, %v557_v17  ;;  %v251_v19 = vadd.f32 %v250_v6, %v248_v5  ;;  %v252_v39 = vmax.f32 %v687_v23, 0.0 }
  0x39   :  { %v739_v9 = vpop.eup %560  ;;  %v213_v20 = vadd.f32 %v212_v2, %v209_v10  ;;  %v300_v22 = vmul.f32 %v299_v11, %v291_v18  ;;  %v144_v24 = vadd.f32 %v143_v13, %v136_v63  ;;  %v311_v28 = vadd.f32 1.0, %v559_v14  ;;  %v335_v17 = vld [vmem:[#allocation2 + $0x8] sm:$0x3] }
  0x3a   :  { %v741_v25 = vpop.eup %562  ;;  %v302_v26 = vmul.f32 %v301_v15, %v298_v7  ;;  %v196_v27 = vadd.f32 %v195_v16, %v188_v8  ;;  %v149_v31 = vmul.f32 1.442695, %v739_v9  ;;  %v253_v40 = vmul.f32 %v547_v47, %v687_v23 }
  0x3b   :  { %v743_v29 = vpop.eup %564  ;;  %214 = vst [vmem:[#allocation2] sm:$0x3] %v213_v20  ;;  %v145_v30 = vmul.f32 %v144_v24, %v83_v12  ;;  %v201_v32 = vmul.f32 1.442695, %v741_v25  ;;  %570 = vlog2.f32 %v311_v28  ;;  %v304_v49 = vmax.f32 %v696_v38, 0.0 }
  0x3c   :  { %v747_v33 = vpop.eup %566  ;;  %v303_v34 = vadd.f32 %v302_v26, %v300_v22  ;;  %v197_v36 = vmul.f32 %v196_v27, %v737_v21  ;;  %572 = vpow2.f32 %v149_v31  ;;  %v267_v41 = vmul.f32 1.442695, %v743_v29 }
  0x3d   :  { %574 = vpow2.f32 %v201_v32  ;;  %v319_v44 = vmul.f32 1.442695, %v747_v33  ;;  %v254_v48 = vsub.f32 %v252_v39, %v253_v40  ;;  %v305_v50 = vmul.f32 %v730_v51, %v696_v38  ;;  %v220_v40 = vld [vmem:[#allocation2 + $0x4] sm:$0x3] }
  0x3e   :  { %v327_v42 = vadd.f32 %v303_v34, %v251_v19  ;;  %v210_v43 = vadd.f32 %v197_v36, %v145_v30  ;;  %576 = vpow2.f32 %v267_v41  ;;  %v461_v11 = vsel %vm84_vm1, 1.0, %v603_v0 }
  0x3f   :  { %578 = vpow2.f32 %v319_v44  ;;  %v306_v55 = vsub.f32 %v304_v49, %v305_v50  ;;  %v464_v13 = vsel %vm101_vm2, 1.0, %v603_v0  ;;  %v87_v14 = vmul.f32 0.98, %v461_v11 }
  0x40   :  { %v332_v45 = vadd.f32 %v331_v35, %v327_v42  ;;  %v217_v46 = vadd.f32 %v216_v37, %v210_v43  ;;  %v104_v15 = vmul.f32 0.98, %v464_v13  ;;  %v206_v3 = vmul.f32 %v741_v25, %v464_v13  ;;  %v339_v43 = vld [vmem:[#allocation2 + $0xa] sm:$0x3] }
  0x41   :  { %v569_v23 = vpop.eup %568  ;;  %v88_v22 = vadd.f32 0.01, %v87_v14  ;;  %v272_v4 = vmul.f32 %v743_v29, %v461_v11  ;;  %v324_v28 = vmul.f32 %v747_v33, %v464_v13 }
  0x42   :  { %v348_v47 = vld [vmem:[#allocation2] sm:$0x3]  ;;  %333 = vst [vmem:[#allocation2 + $0x6] sm:$0x3] %v332_v45  ;;  %218 = vst [vmem:[#allocation2 + $0x2] sm:$0x3] %v217_v46 }
  0x43   :  { %v350_v52 = vsel %vm349_vm0, %v348_v47, 0.0  ;;  %v261_v53 = vmul.f32 0.6931472, %v569_v23  ;;  %v105_v26 = vadd.f32 0.01, %v104_v15 }
  0x44   :  { %351 = vadd.xlane.f32.xlu0 %v350_v52 }
  0x45   :  { %v262_v54 = vadd.f32 %v261_v53, %v254_v48  ;;  %v571_v56 = vpop.eup %570 }
  0x46   :  { %v573_v57 = vpop.eup %572  ;;  %v313_v58 = vmul.f32 0.6931472, %v571_v56 }
  0x47   :  { %v575_v59 = vpop.eup %574  ;;  %v151_v60 = vadd.f32 1.0, %v573_v57  ;;  %v263_v63 = vmul.f32 %v262_v54, %v83_v12 }
  0x48   :  { %v577_v61 = vpop.eup %576  ;;  %v314_v38 = vadd.f32 %v313_v58, %v306_v55  ;;  %v203_v51 = vadd.f32 1.0, %v575_v59 }
  0x49   :  { %v397_v62 = vld [vmem:[#allocation2 + $0x6] sm:$0x3]  ;;  %v361_v18 = vld [vmem:[#allocation2 + $0x2] sm:$0x3]  ;;  %v579_v1 = vpop.eup %578  ;;  %580 = vlog2.f32 %v151_v60  ;;  %v269_v6 = vadd.f32 1.0, %v577_v61 }
  0x4a   :  { %v398_v2 = vsel %vm349_vm0, %v397_v62, 0.0  ;;  %v362_v5 = vsel %vm349_vm0, %v361_v18, 0.0  ;;  %v315_v7 = vmul.f32 %v314_v38, %v737_v21  ;;  %582 = vlog2.f32 %v203_v51 }
  0x4b   :  { %399 = vadd.xlane.f32.xlu1 %v398_v2  ;;  %363 = vadd.xlane.f32.xlu0 %v362_v5  ;;  %v321_v8 = vadd.f32 1.0, %v579_v1  ;;  %584 = vlog2.f32 %v269_v6  ;;  %v154_v21 = vmul.f32 %v739_v9, %v461_v11 }
  0x4c   :  { %v328_v10 = vadd.f32 %v315_v7, %v263_v63 }
  0x4d   :  { %586 = vlog2.f32 %v321_v8 }
  0x4e   :  { %v336_v12 = vadd.f32 %v335_v17, %v328_v10 }
  0x50   :  { %337 = vst [vmem:[#allocation2 + $0x8] sm:$0x3] %v336_v12 }
  0x53   :  { %v581_v16 = vpop.eup %580 }
  0x54   :  { %v583_v20 = vpop.eup %582  ;;  %v153_v24 = vmul.f32 0.6931472, %v581_v16 }
  0x55   :  { %v585_v19 = vpop.eup %584  ;;  %v205_v27 = vmul.f32 0.6931472, %v583_v20 }
  0x56   :  { %v155_v0 = vsub.f32 %v153_v24, %v154_v21  ;;  %v271_v31 = vmul.f32 0.6931472, %v585_v19 }
  0x57   :  { %v587_v30 = vpop.eup %586  ;;  %v409_v32 = vld [vmem:[#allocation2 + $0x8] sm:$0x3]  ;;  %v207_v34 = vsub.f32 %v205_v27, %v206_v3 }
  0x58   :  { %v323_v35 = vmul.f32 0.6931472, %v587_v30  ;;  %v410_v9 = vsel %vm349_vm0, %v409_v32, 0.0  ;;  %v156_v36 = vmul.f32 %v155_v0, %v88_v22  ;;  %v273_v25 = vsub.f32 %v271_v31, %v272_v4 }
  0x59   :  { %411 = vadd.xlane.f32.xlu0 %v410_v9  ;;  %v208_v37 = vmul.f32 %v207_v34, %v105_v26  ;;  %v346_v0 = vlaneseq }
  0x5a   :  { %v325_v39 = vsub.f32 %v323_v35, %v324_v28  ;;  %v274_v29 = vmul.f32 %v273_v25, %v88_v22 }
  0x5b   :  { %v211_v41 = vadd.f32 %v208_v37, %v156_v36  ;;  %v347_v31 = vshrl.u32 %v346_v0, 7 }
  0x5c   :  { %v326_v42 = vmul.f32 %v325_v39, %v105_v26 }
  0x5d   :  { %v221_v44 = vadd.f32 %v220_v40, %v211_v41  ;;  %vm388_vm3 = vcmp.eq.s32.totalorder %v347_v31, 1  ;;  %vm385_vm4 = vcmp.eq.s32.totalorder %v347_v31, 0  ;;  %vm392_vm5 = vcmp.eq.s32.totalorder %v347_v31, 2 }
  0x5e   :  { %v329_v33 = vadd.f32 %v326_v42, %v274_v29 }
  0x5f   :  { %222 = vst [vmem:[#allocation2 + $0x4] sm:$0x3] %v221_v44 }
  0x60   :  { %v340_v45 = vadd.f32 %v339_v43, %v329_v33 }
  0x62   :  { %341 = vst [vmem:[#allocation2 + $0xa] sm:$0x3] %v340_v45 }
  0x66   :  { %v373_v46 = vld [vmem:[#allocation2 + $0x4] sm:$0x3] }
  0x67   :  { %v374_v48 = vsel %vm349_vm0, %v373_v46, 0.0 }
  0x68   :  { %375 = vadd.xlane.f32.xlu1 %v374_v48 }
  0x69   :  { %v421_v49 = vld [vmem:[#allocation2 + $0xa] sm:$0x3] }
  0x6a   :  { %v422_v50 = vsel %vm349_vm0, %v421_v49, 0.0 }
  0x6c   :  { %423 = vadd.xlane.f32.xlu1 %v422_v50 }
  0xd1   :  { %v352_v23 = vpop.xlane.xlu0 %351 }
  0xd2   :  { %v353_v47 = vrot.slane %v352_v23, 4 }
  0xd4   :  { %v354_v52 = vadd.f32 %v353_v47, %v352_v23 }
  0xd6   :  { %v355_v53 = vrot.slane %v354_v52, 2 }
  0xd8   :  { %v364_v54 = vpop.xlane.xlu0 %363  ;;  %v356_v55 = vadd.f32 %v355_v53, %v354_v52  ;;  %v400_v38 = vpop.xlane.xlu1 %399 }
  0xd9   :  { %v365_v56 = vrot.slane %v364_v54, 4  ;;  %v401_v1 = vrot.slane %v400_v38, 4 }
  0xda   :  { %v357_v57 = vrot.slane %v356_v55, 1 }
  0xdb   :  { %v366_v58 = vadd.f32 %v365_v56, %v364_v54  ;;  %v402_v5 = vadd.f32 %v401_v1, %v400_v38 }
  0xdc   :  { %v358_v59 = vadd.f32 %v357_v57, %v356_v55 }
  0xdd   :  { %v367_v60 = vrot.slane %v366_v58, 2  ;;  %v403_v7 = vrot.slane %v402_v5, 2 }
  0xde   :  { %494 = vpush %v358_v59 }
  0xdf   :  { %v368_v61 = vadd.f32 %v367_v60, %v366_v58  ;;  %v404_v13 = vadd.f32 %v403_v7, %v402_v5 }
  0xe1   :  { %v369_v62 = vrot.slane %v368_v61, 1  ;;  %v405_v20 = vrot.slane %v404_v13, 1 }
  0xe3   :  { %v370_v18 = vadd.f32 %v369_v62, %v368_v61  ;;  %v406_v27 = vadd.f32 %v405_v20, %v404_v13 }
  0xe5   :  { %496 = vpush %v370_v18 }
  0xe6   :  { %v412_v63 = vpop.xlane.xlu0 %411 }
  0xe7   :  { %v413_v51 = vrot.slane %v412_v63, 4 }
  0xe9   :  { %v414_v2 = vadd.f32 %v413_v51, %v412_v63 }
  0xeb   :  { %v415_v6 = vrot.slane %v414_v2, 2 }
  0xed   :  { %v416_v10 = vadd.f32 %v415_v6, %v414_v2 }
  0xef   :  { %v417_v3 = vrot.slane %v416_v10, 1 }
  0xf1   :  { %v418_v26 = vadd.f32 %v417_v3, %v416_v10 }
  0xf5   :  { %v376_v8 = vpop.xlane.xlu1 %375 }
  0xf6   :  { %v377_v17 = vrot.slane %v376_v8, 4 }
  0xf8   :  { %v378_v11 = vadd.f32 %v377_v17, %v376_v8 }
  0xf9   :  { %v424_v12 = vpop.xlane.xlu1 %423 }
  0xfa   :  { %v379_v14 = vrot.slane %v378_v11, 2  ;;  %v425_v15 = vrot.slane %v424_v12, 4 }
  0xfc   :  { %v426_v21 = vadd.f32 %v425_v15, %v424_v12  ;;  %v380_v16 = vadd.f32 %v379_v14, %v378_v11 }
  0xfe   :  { %v427_v22 = vrot.slane %v426_v21, 2  ;;  %v381_v24 = vrot.slane %v380_v16, 1 }
 0x100   :  { %v428_v4 = vadd.f32 %v427_v22, %v426_v21  ;;  %v382_v19 = vadd.f32 %v381_v24, %v380_v16 }
 0x102   :  { %498 = vpush %v382_v19  ;;  %v429_v28 = vrot.slane %v428_v4, 1 }
 0x103   :  { %500 = vpush %v406_v27 }
 0x104   :  { %502 = vpush %v418_v26  ;;  %v430_v30 = vadd.f32 %v429_v28, %v428_v4 }
 0x106   :  { %504 = vpush %v430_v30 }
 0x10f   :  { %s495_s1 = spop %494 }
 0x110   :  { %s360_s7 = smul.f32 0.0009765625, %s495_s1 }
 0x112   :  { %v386_v34 = vstv %s360_s7 }
 0x113   :  { %v387_v9 = vsel %vm385_vm4, %v386_v34, 0.0 }
 0x116   :  { %s497_s2 = spop %496 }
 0x117   :  { %s372_s5 = smul.f32 0.001953125, %s497_s2 }
 0x119   :  { %v389_v32 = vstv %s372_s5 }
 0x11a   :  { %v390_v35 = vsel %vm388_vm3, %v389_v32, 0.0 }
 0x11b   :  { %v391_v36 = vadd.f32 %v390_v35, %v387_v9 }
 0x133   :  { %s499_s8 = spop %498 }
 0x134   :  { %s384_s9 = smul.f32 %s499_s8, %s492_s6  ;;  %s501_s10 = spop %500 }
 0x135   :  { %s408_s11 = smul.f32 0.0009765625, %s501_s10  ;;  %s503_s12 = spop %502 }
 0x136   :  { %v393_v25 = vstv %s384_s9  ;;  %s420_s13 = smul.f32 0.001953125, %s503_s12 }
 0x137   :  { %v394_v37 = vsel %vm392_vm5, %v393_v25, 0.0  ;;  %v433_v39 = vstv %s408_s11  ;;  %s505_s14 = spop %504 }
 0x138   :  { %v395_v40 = vadd.f32 %v394_v37, %v391_v36  ;;  %v434_v29 = vsel %vm385_vm4, %v433_v39, 0.0  ;;  %v435_v41 = vstv %s420_s13  ;;  %s432_s15 = smul.f32 %s505_s14, %s492_s6 }
 0x139   :  { %v436_v42 = vsel %vm388_vm3, %v435_v41, 0.0 }
 0x13a   :  { %396 = vst [vmem:[%s787_s3] sm:$0xff] %v395_v40  ;;  %v437_v43 = vadd.f32 %v436_v42, %v434_v29  ;;  %v438_v44 = vstv %s432_s15 }
 0x13b   :  { %v439_v33 = vsel %vm392_vm5, %v438_v44, 0.0 }
 0x13c   :  { %v440_v45 = vadd.f32 %v439_v33, %v437_v43 }
 0x13e   :  { %493 = vst [vmem:[%s787_s3 + $0x8] sm:$0xff] %v440_v45 }
 0x13f   :  { %447 = vsyncpa [#allocation4], 1 }

</bundles_post_ra>
